<compile_context>
chip_gen: v7x
topology: tpu7x:2x2x1
jax: 0.10.0
libtpu: 0.0.40
codegen_flags: <defaults>
</compile_context>

<pallas_src>
import functools

import jax
import jax.numpy as jnp
from jax.experimental import pallas as pl
from jax.experimental.pallas import tpu as pltpu

ALPHA = 0.1
LANE = 128


def _node_classifier_kernel(x_ref, w_ref, a_ref, out_ref, *, niter):
    # One grid step == one source graph k (leading dim squeezed by BlockSpec).
    x = x_ref[...]  # (N, H)     bf16
    w = w_ref[...]  # (H, Cpad)  bf16, pre-transposed + zero-padded in wrapper
    a = a_ref[...]  # (N, N)     bf16, normalized A_hat

    # TODO(synk): feat_drop (MixedDropout) is identity in eval mode; training-mode
    # dropout mask (pltpu.prng_*) is intentionally omitted here.
    local = jnp.dot(x, w, preferred_element_type=jnp.float32)  # (N, Cpad) f32
    alpha_local = ALPHA * local
    one_minus_alpha = 1.0 - ALPHA

    z = local
    for _ in range(niter):  # compile-time trip count -> fully unrolled
        # bf16 MXU inputs, f32 accumulation; Z/local/axpy remain f32 (v5e VPU path).
        prop = jnp.dot(a, z.astype(jnp.bfloat16),
                       preferred_element_type=jnp.float32)      # (N, Cpad) f32
        z = one_minus_alpha * prop + alpha_local

    out_ref[...] = z.astype(out_ref.dtype)  # lane-dense (N, Cpad) store


def _compute_vmem_limit(per_step_block_bytes):
    """Size the scoped-VMEM limit from real operand blocks, capped to the device."""
    need = 2 * per_step_block_bytes  # BlockSpec double-buffers each in/out block
    need += 8 << 20                  # intermediates (local/z/prop) + headroom
    try:
        cap = int(pltpu.get_tpu_info().vmem_capacity_bytes)
    except Exception:  # interpreter / older runtimes
        cap = 64 << 20               # conservative (v7x per-TC) fallback
    return int(min(max(need, 16 << 20), cap - (2 << 20)))


def node_classifier_forward(x_stack, w_stack, a_hat_stack, step):
    """x_stack: [K,N,H], w_stack: [K,C,H], a_hat_stack: [K,N,N] -> list of K [N,C] logits."""
    K, N, H = x_stack.shape
    C = w_stack.shape[1]
    c_pad = ((C + LANE - 1) // LANE) * LANE

    # Wrapper-side (free) layout work: transpose W to [K, H, C], zero-pad the class dim
    # to a full 128-lane width, and cast all MXU inputs (X, W, A) to bf16.
    x_bf16 = x_stack.astype(jnp.bfloat16)
    w_t = jnp.transpose(w_stack, (0, 2, 1)).astype(jnp.bfloat16)   # [K, H, C]
    w_t_pad = jnp.pad(w_t, ((0, 0), (0, 0), (0, c_pad - C)))        # [K, H, c_pad]
    a_bf16 = a_hat_stack.astype(jnp.bfloat16)                       # [K, N, N]

    per_step_block_bytes = (
        N * H * 2          # X block
        + H * c_pad * 2    # W block
        + N * N * 2        # A block
        + N * c_pad * 4    # out block
    )
    vmem_limit = _compute_vmem_limit(per_step_block_bytes)

    kernel = functools.partial(_node_classifier_kernel, niter=int(step))

    grid_spec = pltpu.PrefetchScalarGridSpec(
        num_scalar_prefetch=0,
        grid=(K,),
        in_specs=[
            pl.BlockSpec((None, N, H), lambda k: (k, 0, 0)),
            pl.BlockSpec((None, H, c_pad), lambda k: (k, 0, 0)),
            pl.BlockSpec((None, N, N), lambda k: (k, 0, 0)),
        ],
        out_specs=pl.BlockSpec((None, N, c_pad), lambda k: (k, 0, 0)),
    )

    out = pl.pallas_call(
        kernel,
        out_shape=jax.ShapeDtypeStruct((K, N, c_pad), jnp.float32),
        grid_spec=grid_spec,
        compiler_params=pltpu.CompilerParams(
            dimension_semantics=("parallel",),   # both v7x TensorCores take sources
            vmem_limit_bytes=vmem_limit,
        ),
    )(x_bf16, w_t_pad, a_bf16)

    out = out[:, :, :C]  # drop lane padding
    return [out[k] for k in range(K)]


def calc_a_hat(adj):
    """Symmetric normalization with self loops: D^-1/2 (A + I) D^-1/2 (plain-JAX glue)."""
    n = adj.shape[0]
    a = adj + jnp.eye(n, dtype=adj.dtype)
    d = jnp.sum(a, axis=1)
    d_inv_sqrt = 1.0 / jnp.sqrt(d)
    return a * d_inv_sqrt[:, None] * d_inv_sqrt[None, :]


if __name__ == "__main__":
    key = jax.random.PRNGKey(0)

    # Small, module-consistent shapes.
    num_source = 2   # K
    num_nodes = 16   # N (per source graph)
    num_hidden = 32  # H
    num_classes = 8  # C
    step = 4         # PPR power-iteration steps

    k_x, k_w, k_a = jax.random.split(key, 3)

    # Per-source encoded node features (is_target=False branch: a list per source).
    x_stack = jax.random.normal(k_x, (num_source, num_nodes, num_hidden), dtype=jnp.float32)

    # Deterministic nn.Linear(num_hidden, num_classes, bias=False) weights per source.
    w_stack = (
        jax.random.normal(k_w, (num_source, num_classes, num_hidden), dtype=jnp.float32)
        * (1.0 / jnp.sqrt(num_hidden))
    )

    # Random symmetric binary adjacency per source, then normalize (calc_A_hat).
    raw = jax.random.bernoulli(k_a, 0.3, (num_source, num_nodes, num_nodes)).astype(jnp.float32)
    adj = jnp.maximum(raw, jnp.transpose(raw, (0, 2, 1)))
    a_hat_stack = jnp.stack([calc_a_hat(adj[k]) for k in range(num_source)], axis=0)

    logits_list = node_classifier_forward(x_stack, w_stack, a_hat_stack, step)
    for lg in logits_list:
        jax.block_until_ready(lg)

    # Pure-JAX reference with the same bf16 rounding of X/W/A and of Z at each A@Z
    # input (f32 accumulation), so only accumulation-order differences remain.
    x_ref = x_stack.astype(jnp.bfloat16).astype(jnp.float32)
    w_ref = w_stack.astype(jnp.bfloat16).astype(jnp.float32)
    a_ref = a_hat_stack.astype(jnp.bfloat16).astype(jnp.float32)
    for k in range(num_source):
        local = x_ref[k] @ w_ref[k].T
        z = local
        for _ in range(step):
            zb = z.astype(jnp.bfloat16).astype(jnp.float32)
            z = (1.0 - ALPHA) * (a_ref[k] @ zb) + ALPHA * local
        assert jnp.allclose(logits_list[k], z, atol=2e-3, rtol=2e-3)

    print("KERNEL_OK")
</pallas_src>

<mosaic_0001>
module attributes {stable_mosaic.version = 11 : i64} {
  func.func @_node_classifier_kernel(%arg0: i32, %arg1: memref<1x16x32xbf16, #tpu.memory_space<vmem>>, %arg2: memref<1x32x128xbf16, #tpu.memory_space<vmem>>, %arg3: memref<1x16x16xbf16, #tpu.memory_space<vmem>>, %arg4: memref<1x16x128xf32, #tpu.memory_space<vmem>>) attributes {dimension_semantics = [#tpu.dimension_semantics<parallel>], iteration_bounds = array<i64: 2>, scalar_prefetch = 0 : i64, scratch_operands = 0 : i64, tpu.core_type = #tpu.core_type<tc>, window_params = [{transform_indices = @transform_0, window_bounds = array<i64: 1, 16, 32>}, {transform_indices = @transform_1, window_bounds = array<i64: 1, 32, 128>}, {transform_indices = @transform_2, window_bounds = array<i64: 1, 16, 16>}, {transform_indices = @transform_3, window_bounds = array<i64: 1, 16, 128>}]} {
    %c0 = arith.constant 0 : index
    %c0_0 = arith.constant 0 : index
    %c0_1 = arith.constant 0 : index
    %0 = vector.load %arg1[%c0, %c0_0, %c0_1] : memref<1x16x32xbf16, #tpu.memory_space<vmem>>, vector<1x16x32xbf16>
    %1 = vector.shape_cast %0 : vector<1x16x32xbf16> to vector<16x32xbf16>
    %c0_2 = arith.constant 0 : index
    %c0_3 = arith.constant 0 : index
    %c0_4 = arith.constant 0 : index
    %2 = vector.load %arg2[%c0_2, %c0_3, %c0_4] : memref<1x32x128xbf16, #tpu.memory_space<vmem>>, vector<1x32x128xbf16>
    %3 = vector.shape_cast %2 : vector<1x32x128xbf16> to vector<32x128xbf16>
    %c0_5 = arith.constant 0 : index
    %c0_6 = arith.constant 0 : index
    %c0_7 = arith.constant 0 : index
    %4 = vector.load %arg3[%c0_5, %c0_6, %c0_7] : memref<1x16x16xbf16, #tpu.memory_space<vmem>>, vector<1x16x16xbf16>
    %5 = vector.shape_cast %4 : vector<1x16x16xbf16> to vector<16x16xbf16>
    %cst = arith.constant dense<0.000000e+00> : vector<16x128xf32>
    %6 = tpu.matmul %1, %3, %cst {dimension_numbers = #tpu.dot_dimension_numbers<[1], [0], [0], [1], [0, 0, 1, 1], [], []>} : vector<16x32xbf16>, vector<32x128xbf16>, vector<16x128xf32> -> vector<16x128xf32>
    %cst_8 = arith.constant 1.000000e-01 : f32
    %7 = vector.broadcast %cst_8 : f32 to vector<16x128xf32>
    %8 = arith.mulf %7, %6 : vector<16x128xf32>
    %9 = arith.truncf %6 : vector<16x128xf32> to vector<16x128xbf16>
    %cst_9 = arith.constant dense<0.000000e+00> : vector<16x128xf32>
    %10 = tpu.matmul %5, %9, %cst_9 {dimension_numbers = #tpu.dot_dimension_numbers<[1], [0], [0], [1], [0, 0, 1, 1], [], []>} : vector<16x16xbf16>, vector<16x128xbf16>, vector<16x128xf32> -> vector<16x128xf32>
    %cst_10 = arith.constant 0.899999976 : f32
    %11 = vector.broadcast %cst_10 : f32 to vector<16x128xf32>
    %12 = arith.mulf %11, %10 : vector<16x128xf32>
    %13 = arith.addf %12, %8 : vector<16x128xf32>
    %14 = arith.truncf %13 : vector<16x128xf32> to vector<16x128xbf16>
    %cst_11 = arith.constant dense<0.000000e+00> : vector<16x128xf32>
    %15 = tpu.matmul %5, %14, %cst_11 {dimension_numbers = #tpu.dot_dimension_numbers<[1], [0], [0], [1], [0, 0, 1, 1], [], []>} : vector<16x16xbf16>, vector<16x128xbf16>, vector<16x128xf32> -> vector<16x128xf32>
    %cst_12 = arith.constant 0.899999976 : f32
    %16 = vector.broadcast %cst_12 : f32 to vector<16x128xf32>
    %17 = arith.mulf %16, %15 : vector<16x128xf32>
    %18 = arith.addf %17, %8 : vector<16x128xf32>
    %19 = arith.truncf %18 : vector<16x128xf32> to vector<16x128xbf16>
    %cst_13 = arith.constant dense<0.000000e+00> : vector<16x128xf32>
    %20 = tpu.matmul %5, %19, %cst_13 {dimension_numbers = #tpu.dot_dimension_numbers<[1], [0], [0], [1], [0, 0, 1, 1], [], []>} : vector<16x16xbf16>, vector<16x128xbf16>, vector<16x128xf32> -> vector<16x128xf32>
    %cst_14 = arith.constant 0.899999976 : f32
    %21 = vector.broadcast %cst_14 : f32 to vector<16x128xf32>
    %22 = arith.mulf %21, %20 : vector<16x128xf32>
    %23 = arith.addf %22, %8 : vector<16x128xf32>
    %24 = arith.truncf %23 : vector<16x128xf32> to vector<16x128xbf16>
    %cst_15 = arith.constant dense<0.000000e+00> : vector<16x128xf32>
    %25 = tpu.matmul %5, %24, %cst_15 {dimension_numbers = #tpu.dot_dimension_numbers<[1], [0], [0], [1], [0, 0, 1, 1], [], []>} : vector<16x16xbf16>, vector<16x128xbf16>, vector<16x128xf32> -> vector<16x128xf32>
    %cst_16 = arith.constant 0.899999976 : f32
    %26 = vector.broadcast %cst_16 : f32 to vector<16x128xf32>
    %27 = arith.mulf %26, %25 : vector<16x128xf32>
    %28 = arith.addf %27, %8 : vector<16x128xf32>
    %c0_17 = arith.constant 0 : index
    %c0_18 = arith.constant 0 : index
    %c0_19 = arith.constant 0 : index
    %29 = vector.load %arg4[%c0_17, %c0_18, %c0_19] : memref<1x16x128xf32, #tpu.memory_space<vmem>>, vector<1x16x128xf32>
    %30 = vector.shape_cast %29 : vector<1x16x128xf32> to vector<16x128xf32>
    %31 = vector.shape_cast %28 : vector<16x128xf32> to vector<1x16x128xf32>
    tpu.vector_store %arg4[%c0_17, %c0_18, %c0_19], %31 {strides = array<i32>} : memref<1x16x128xf32, #tpu.memory_space<vmem>>, vector<1x16x128xf32>,
    return
  }
  func.func @transform_0(%arg0: i32) -> (i32, i32, i32) {
    %c0_i32 = arith.constant 0 : i32
    %c0_i32_0 = arith.constant 0 : i32
    %c0_i32_1 = arith.constant 0 : i32
    return %arg0, %c0_i32, %c0_i32_0 : i32, i32, i32
  }
  func.func @transform_1(%arg0: i32) -> (i32, i32, i32) {
    %c0_i32 = arith.constant 0 : i32
    %c0_i32_0 = arith.constant 0 : i32
    %c0_i32_1 = arith.constant 0 : i32
    return %arg0, %c0_i32, %c0_i32_0 : i32, i32, i32
  }
  func.func @transform_2(%arg0: i32) -> (i32, i32, i32) {
    %c0_i32 = arith.constant 0 : i32
    %c0_i32_0 = arith.constant 0 : i32
    %c0_i32_1 = arith.constant 0 : i32
    return %arg0, %c0_i32, %c0_i32_0 : i32, i32, i32
  }
  func.func @transform_3(%arg0: i32) -> (i32, i32, i32) {
    %c0_i32 = arith.constant 0 : i32
    %c0_i32_0 = arith.constant 0 : i32
    %c0_i32_1 = arith.constant 0 : i32
    return %arg0, %c0_i32, %c0_i32_0 : i32, i32, i32
  }
}

</mosaic_0001>

<bundles_post_ra>
// kernel: tpu_custom_call.1
= control target key start
LH: loop header
LB: loop body
LE: loop exit
PB: predicated region body
PF: predicated region fallthrough
CT: control target
= control target key end

     0   :  { %s1268_s0 = inlined_call_operand.hbm [shape: bf16[2,16,32], index: 0, kind: input, shape index: {}]   ;;  %s1269_s1 = inlined_call_operand.hbm [shape: bf16[2,32,128], index: 1, kind: input, shape index: {}]   ;;  %s1270_s2 = inlined_call_operand.hbm [shape: bf16[2,16,16], index: 2, kind: input, shape index: {}]   ;;  %s1271_s3 = inlined_call_operand.hbm [shape: f32[2,16,128], index: 3, kind: output, shape index: {}]  }
   0x1   :  { %1277 = sst [smem:[#allocation12_spill]] %s1268_s0 }
   0x2   :  { %8 = vsyncpa [#allocation3], 0 }
   0x3   :  { %10 = vsyncpa [#allocation3 + $0x1], 0 }
   0x4   :  { %11 = vsyncpa [#allocation6], 0 }
   0x5   :  { %13 = vsyncpa [#allocation6 + $0x1], 0 }
   0x6   :  { %14 = vsyncpa [#allocation4], 0 }
   0x7   :  { %16 = vsyncpa [#allocation4 + $0x1], 0  ;;  %s1000_s12 = smov 0   ;;  %s1002_s13 = smov 0  }
   0x8   :  { %s1004_s14 = smov 0   ;;  %s1006_s15 = smov 0  }
   0x9 LB: > { %s1021_s16 = sadd.s32 4294967295, %s968_s15   ;;  %s664_s17 = sadd.s32 4294967294, %s968_s15   ;;  %s968_s15 = sphi %s1006_s15, %s1296_s15   ;;  %s964_s14 = sphi %s1004_s14, %s1295_s14   ;;  %s960_s13 = sphi %s1002_s13, %s1294_s13   ;;  %s956_s12 = sphi %s1000_s12, %s1293_s12  }
   0xa   : > { %s1025_s18 = sadd.s32 1, %s968_s15   ;;  %s29_s19 = sadd.s32 1, %s964_s14 }
   0xb   : > { %s26_s20 = ssub.s32 %s968_s15, %s1025_s18  ;;  %p36_p0 = scmp.ne.s32.totalorder %s964_s14, %s960_s13 }
   0xc   : > { %p27_p1 = scmp.eq.s32.totalorder %s26_s20, 0  ;;  %p37_p2 = scmp.eq.s32.totalorder %s968_s15, 0 }
   0xd   : > { %p42_p3 = scmp.ne.s32.totalorder %s960_s13, %s956_s12  ;;  %p43_p4 = scmp.eq.s32.totalorder %s1021_s16, 0 }
   0xe   : > { %s1037_s21 = scalar_select %p27_p1, %s964_s14, %s29_s19  }
   0xf   : > { %p38_p5 = por %p37_p2, %p36_p0  ;;  %p1039_p6 = por %p43_p4, %p42_p3 }
  0x10   : > { %p118_p7 = scmp.eq.s32.totalorder %s1021_s16, 1  ;;  %p124_p8 = scmp.eq.s32.totalorder %s664_s17, 1 }
  0x11   : > { %s1278_s22 = scalar_select %p1039_p6, 1, 0 }
  0x12   : > { %p764_p10 = scmp.lt.s32.totalorder %s968_s15, 2  ;;  %p1046_p11 = por %p118_p7, %p36_p0 }
  0x13   : > { %p1050_p12 = por %p124_p8, %p42_p3  ;;  %s1055_s25 = sand.u32 1, %s964_s14  }
  0x14   : > { %s1279_s23 = scalar_select %p1046_p11, 1, 0 }
  0x15   : > { %s1280_s24 = scalar_select %p1050_p12, 1, 0 }
  0x16   : > { %p1057_p13 = pnand %p764_p10, %p38_p5  ;;  %s165_s27 = sand.u32 1, %s968_s15  }
  0x17   : > { %s670_s28 = sshll.u32 %s1055_s25, 4  ;;  %s696_s29 = sshll.u32 %s968_s15, 8 }
  0x18   : > { %s1067_s5 = scalar_lea.hbm %s1269_s1, %s696_s29  ;;  %s169_s6 = scalar_lea.vmem [#allocation5], %s670_s28 }
  0x19   : > { %s176_s7 = sshll.u32 %s169_s6, 4  ;;  %s1072_s8 = scalar_lea.sflag [#allocation6], %s165_s27  ;;  %s1069_s7 = int_to_ptr.vmem [resolvable:$true] %s176_s7 }
  0x1a   : > { %s808_s9 = scalar_lea.hbm %s1067_s5, 256  ;;  %p1078_p2 = pneg %p1057_p13 }
  0x1b   : > { %p809_p1 = scmp.ne.s32.totalorder %s1067_s5, %s808_s9  ;;  %s813_s19 = scalar_lea.hbm %s1269_s1, 512 }
  0x1c   : > { %p814_p5 = scmp.lt.u32.totalorder %s1067_s5, %s1269_s1  ;;  %p815_p7 = scmp.lt.u32.totalorder %s813_s19, %s808_s9 }
  0x1d   : > { %p811_p3 = pnand %p1078_p2, %p809_p1  ;;  %p817_p10 = scmp.lt.u32.totalorder %s808_s9, %s1067_s5 }
  0x1e   : > { %p816_p8 = por %p815_p7, %p814_p5 }
  0x1f   : > { %p812_p4 = pneg %p811_p3 }
  0x20   : > { %p818_p9 = por %p817_p10, %p816_p8 }
  0x22   : > { %p819_p0 = pnand %p818_p9, %p812_p4 }
  0x24   : > { %822 = shalt.err (!%p819_p0)
}
  0x25   : > { %s823_s27 = scalar_lea.vmem %s1069_s7, 256  ;;  %s970_s29 = smov [#allocation5]  }
  0x26   : > { %p824_p1 = scmp.ne.s32.totalorder %s1069_s7, %s823_s27  ;;  %s828_s30 = sshll.u32 %s970_s29, 4  ;;  %s829_s30 = int_to_ptr.vmem [resolvable:$false] %s828_s30 }
  0x27   : > { %s830_s4 = scalar_lea.vmem %s829_s30, 512  ;;  %p831_p11 = scmp.lt.s32.totalorder %s1069_s7, %s829_s30 }
  0x28   : > { %p826_p3 = pnand %p824_p1, %p1078_p2  ;;  %p832_p6 = scmp.lt.s32.totalorder %s830_s4, %s823_s27 }
  0x2a   : > { %p827_p12 = pneg %p826_p3  ;;  %p833_p5 = por %p832_p6, %p831_p11 }
  0x2c   : > { %p834_p7 = pnand %p833_p5, %p827_p12 }
  0x2e   : > { %837 = shalt.err (!%p834_p7)
}
  0x2f   : > { %s1274_s6 = smov 64   ;;  %s972_s9 = smov 4  }
  0x30   : > { %756 = dma.hbm_to_vmem [thread:$0]  (!%p1057_p13), %s1067_s5, 256, %s1069_s7, %s1072_s8, %s1274_s6, %s1274_s6, %s972_s9  }
  0x31   : > { %p205_p6 = scmp.lt.s32.totalorder %s968_s15, 3  ;;  %s667_s11 = sshll.u32 %s1055_s25, 3 }
  0x32   : > { %s1276_s17 = sshll.u32 %s968_s15, 7  ;;  %p1283_p9 = scmp.ge.s32.totalorder %s968_s15, 1 }
  0x33   : > { %s1285_s0 = sld [smem:[#allocation12_spill]]  ;;  %s148_s5 = scalar_lea.vmem [#allocation2], %s667_s11 }
  0x34   : > { %p1110_p11 = pnand %p1283_p9, %p205_p6  ;;  %s155_s7 = sshll.u32 %s148_s5, 4  ;;  %s1123_s7 = int_to_ptr.vmem [resolvable:$true] %s155_s7 }
  0x35   : > { %s145_s29 = scalar_lea.sflag [#allocation3], %s1055_s25 }
  0x36   : > { %s1284_s19 = scalar_select %p1110_p11, 1, 0 }
  0x39   : > { %s1119_s27 = scalar_lea.hbm %s1285_s0, %s1276_s17  ;;  %s843_s20 = scalar_lea.hbm %s1285_s0, 256 }
  0x3a   : > { %s838_s30 = scalar_lea.hbm %s1119_s27, 128  ;;  %p844_p8 = scmp.lt.u32.totalorder %s1119_s27, %s1285_s0 }
  0x3b   : > { %p839_p12 = scmp.ne.s32.totalorder %s1119_s27, %s838_s30  ;;  %p845_p10 = scmp.lt.u32.totalorder %s843_s20, %s838_s30 }
  0x3c   : > { %p847_p3 = scmp.lt.u32.totalorder %s838_s30, %s1119_s27 }
  0x3d   : > { %p841_p0 = pnand %p839_p12, %p1078_p2  ;;  %p846_p1 = por %p845_p10, %p844_p8 }
  0x3f   : > { %p842_p4 = pneg %p841_p0  ;;  %p848_p5 = por %p847_p3, %p846_p1 }
  0x41   : > { %p849_p7 = pnand %p848_p5, %p842_p4 }
  0x43   : > { %852 = shalt.err (!%p849_p7)
}
  0x44   : > { %s853_s5 = scalar_lea.vmem %s1123_s7, 128  ;;  %s973_s6 = smov [#allocation2]  }
  0x45   : > { %p854_p6 = scmp.ne.s32.totalorder %s1123_s7, %s853_s5  ;;  %s858_s4 = sshll.u32 %s973_s6, 4  ;;  %s859_s4 = int_to_ptr.vmem [resolvable:$false] %s858_s4 }
  0x46   : > { %s860_s17 = scalar_lea.vmem %s859_s4, 256  ;;  %p861_p0 = scmp.lt.s32.totalorder %s1123_s7, %s859_s4 }
  0x47   : > { %p856_p9 = pnand %p854_p6, %p1078_p2  ;;  %p862_p11 = scmp.lt.s32.totalorder %s860_s17, %s853_s5 }
  0x49   : > { %p857_p12 = pneg %p856_p9  ;;  %p863_p8 = por %p862_p11, %p861_p0 }
  0x4b   : > { %p864_p10 = pnand %p863_p8, %p857_p12 }
  0x4d   : > { %867 = shalt.err (!%p864_p10)
}
  0x4e   : > { %s1286_s30 = smov 64   ;;  %s1287_s20 = sshll.u32 %s968_s15, 7 }
  0x4f   : > { %753 = dma.hbm_to_vmem [thread:$0]  (!%p1057_p13), %s1119_s27, 128, %s1123_s7, %s145_s29, %s1286_s30, %s1286_s30, %s972_s9  }
  0x50   : > { %s1157_s5 = scalar_lea.hbm %s1270_s2, %s1287_s20  ;;  %s190_s4 = scalar_lea.vmem [#allocation7], %s667_s11 }
  0x51   : > { %s197_s17 = sshll.u32 %s190_s4, 4  ;;  %s868_s0 = scalar_lea.hbm %s1157_s5, 128  ;;  %s1161_s17 = int_to_ptr.vmem [resolvable:$true] %s197_s17 }
  0x52   : > { %p869_p11 = scmp.ne.s32.totalorder %s1157_s5, %s868_s0  ;;  %s873_s29 = scalar_lea.hbm %s1270_s2, 256 }
  0x53   : > { %p874_p3 = scmp.lt.u32.totalorder %s1157_s5, %s1270_s2  ;;  %p875_p5 = scmp.lt.u32.totalorder %s873_s29, %s868_s0 }
  0x54   : > { %p871_p4 = pnand %p869_p11, %p1078_p2  ;;  %p877_p6 = scmp.lt.u32.totalorder %s868_s0, %s1157_s5 }
  0x55   : > { %p876_p7 = por %p875_p5, %p874_p3 }
  0x56   : > { %p872_p1 = pneg %p871_p4 }
  0x57   : > { %p878_p9 = por %p877_p6, %p876_p7 }
  0x59   : > { %p879_p12 = pnand %p878_p9, %p872_p1 }
  0x5b   : > { %882 = shalt.err (!%p879_p12)
}
  0x5c   : > { %s883_s25 = scalar_lea.vmem %s1161_s17, 128  ;;  %s974_s11 = smov [#allocation7]  }
  0x5d   : > { %p884_p0 = scmp.ne.s32.totalorder %s1161_s17, %s883_s25  ;;  %s888_s6 = sshll.u32 %s974_s11, 4  ;;  %s889_s6 = int_to_ptr.vmem [resolvable:$false] %s888_s6 }
  0x5e   : > { %s890_s4 = scalar_lea.vmem %s889_s6, 256  ;;  %p891_p11 = scmp.lt.s32.totalorder %s1161_s17, %s889_s6 }
  0x5f   : > { %p886_p8 = pnand %p884_p0, %p1078_p2  ;;  %p892_p4 = scmp.lt.s32.totalorder %s890_s4, %s883_s25 }
  0x61   : > { %p887_p10 = pneg %p886_p8  ;;  %p893_p3 = por %p892_p4, %p891_p11 }
  0x63   : > { %p894_p5 = pnand %p893_p3, %p887_p10 }
  0x65   : > { %897 = shalt.err (!%p894_p5)
}
  0x66   : > { %759 = dma.hbm_to_vmem [thread:$0]  (!%p1057_p13), %s1157_s5, 128, %s1161_s17, %s1072_s8, %s1286_s30, %s1286_s30, %s972_s9  }
  0x67   : > { %p1288_p2 = scmp.ne.s32.totalorder %s1284_s19, 0 }
  0x68   : > { %s1191_s0 = sand.u32 (!%p1288_p2), 1, %s960_s13   ;;  %p1289_p1 = scmp.ne.s32.totalorder (!%p1288_p2), %s1278_s22, 0 }
  0x69   : > { %209 = sbr.rel (%p1288_p2) target bundleno = 1247 (0x4df), region = 32  ;;  %s677_s10 = sshll.u32 (!%p1288_p2), %s1191_s0, 3 }
  0x6a   : > { %s212_s27 = scalar_lea.sflag (!%p1288_p2), [#allocation3], %s1191_s0  ;;  %s215_s7 = scalar_lea.vmem (!%p1288_p2), [#allocation2], %s677_s10 }
  0x70   : > { %943 = dma.done.wait (%p1289_p1), %s212_s27, 128  }
  0x71   : > { %945 = vsyncadd (%p1289_p1), %s212_s27, 4294967168  ;;  %s220_s26 = sand.u32 1, %s1021_s16   ;;  %s678_s8 = sshll.u32 %s1191_s0, 4 }
  0x72   : > { %s221_s9 = scalar_lea.sflag [#allocation6], %s220_s26  ;;  %s224_s19 = scalar_lea.vmem [#allocation5], %s678_s8 }
  0x73   : > { %947 = dma.done.wait (%p1289_p1), %s221_s9, 384  }
  0x74   : > { %949 = vsyncadd (%p1289_p1), %s221_s9, 4294966912  ;;  %v975_v0 = vmov 0.0   ;;  %vm976_vm0 = vmmov 0   ;;  %v804_v1 = vld [vmem:[%s224_s19] sm:$0xff]   ;;  %v805_v2 = vld [vmem:[%s224_s19 + $0x8] sm:$0xff]   ;;  %vm292_vm1 = vcmask 261120  }
  0x75   : > { %710 = vmatprep.subr.bf16.mxu0 %v975_v0  ;;  %714 = vmatprep.mubr.msk.bf16.mxu0 %vm976_vm0, %v975_v0  ;;  %v806_v3 = vld [vmem:[%s215_s7] sm:$0xff]   ;;  %s233_s22 = scalar_lea.vmem [#allocation7], %s677_s10  ;;  %vm345_vm2 = vcmask 130048   ;;  %s265_s30 = scalar_lea.vmem [#allocation8], %s678_s8 }
  0x76   : > { %718 = vmatprep.subr.bf16.mxu1 %v975_v0  ;;  %720 = vmatprep.mubr.msk.bf16.mxu1 %vm976_vm0, %v975_v0  ;;  %v807_v9 = vld [vmem:[%s233_s22] sm:$0xff]   ;;  %s548_s5 = sshll.u32 %s265_s30, 4  ;;  %s698_s17 = sshll.u32 %s1021_s16, 8  ;;  %s1219_s5 = int_to_ptr.vmem [resolvable:$true] %s548_s5 }
  0x77   : > { %711 = vmatpush3.bf16.msra.mxu0 %v804_v1  ;;  %s1224_s28 = scalar_lea.hbm %s1271_s3, %s698_s17  ;;  %s535_s25 = scalar_lea.sflag [#allocation4], %s1191_s0 }
  0x78   : > { %712 = vmatprep.subr.bf16.mxu0 %v975_v0  ;;  %s898_s11 = scalar_lea.vmem %s1219_s5, 256  ;;  %p1290_p7 = scmp.ne.s32.totalorder %s1279_s23, 0 }
  0x79   : > { %p899_p13 = scmp.ne.s32.totalorder %s1219_s5, %s898_s11  ;;  %s977_s16 = smov [#allocation8]  }
  0x7a   : > { %s902_s6 = sshll.u32 %s977_s16, 4  ;;  %s903_s6 = int_to_ptr.vmem [resolvable:$false] %s902_s6 }
  0x7b   : > { %713 = vmatpush3.bf16.msra.mxu0 %v805_v2  ;;  %p900_p6 = pnand %p899_p13, %p1290_p7  ;;  %s904_s4 = scalar_lea.vmem %s903_s6, 512 }
  0x7c   : > { %730 = vmatprep.subr.bf16.mxu0 %v975_v0  ;;  %p905_p12 = scmp.lt.s32.totalorder %s1219_s5, %s903_s6  ;;  %p906_p0 = scmp.lt.s32.totalorder %s904_s4, %s898_s11 }
  0x7d   : > { %p901_p9 = pneg %p900_p6 }
  0x7e   : > { %715 = vmatmul.mubr.msk.bf16.vlgmr.msra.gmra.mrb[0].mxu0 %vm292_vm1, %v806_v3  ;;  %p907_p8 = por %p906_p0, %p905_p12 }
  0x7f   : > { %732 = vmatprep.mubr.msk.bf16.mxu0 %vm976_vm0, %v975_v0 }
  0x80   : > { %p908_p10 = pnand %p907_p8, %p901_p9 }
 0x151   : > { %v330_v4 = vpop.f32.mrb[0].mxu0 }
 0x152   : > { %v716_v5 = vpop.f32.mrb[1].mxu0  ;;  %v337_v13 = vmul.f32 0.1, %v330_v4 }
 0x153   : > { %v333_v6 = vpop.f32.mrb[2].mxu0 }
 0x154   : > { %v717_v7 = vpop.f32.mrb[3].mxu0  ;;  %v339_v8 = vpack.c.bf16 %v333_v6, %v330_v4  ;;  %v338_v15 = vmul.f32 0.1, %v333_v6 }
 0x156   : > { %719 = vmatpush3.bf16.msra.mxu1 %v339_v8 }
 0x157   : > { %724 = vmatprep.subr.bf16.mxu1 %v975_v0 }
 0x159   : > { %721 = vmatmul.mubr.msk.bf16.vlgmr.msra.gmra.mrb[0].mxu1 %vm345_vm2, %v807_v9 }
 0x15a   : > { %726 = vmatprep.mubr.msk.bf16.mxu1 %vm976_vm0, %v975_v0 }
 0x22c   : > { %v383_v10 = vpop.f32.mrb[0].mxu1 }
 0x22d   : > { %v390_v11 = vmul.f32 0.9, %v383_v10  ;;  %v722_v12 = vpop.f32.mrb[1].mxu1 }
 0x22e   : > { %v386_v14 = vpop.f32.mrb[2].mxu1 }
 0x22f   : > { %v391_v16 = vmul.f32 0.9, %v386_v14  ;;  %v723_v17 = vpop.f32.mrb[3].mxu1  ;;  %v392_v18 = vadd.f32 %v390_v11, %v337_v13 }
 0x231   : > { %v393_v19 = vadd.f32 %v391_v16, %v338_v15 }
 0x233   : > { %v394_v20 = vpack.c.bf16 %v393_v19, %v392_v18 }
 0x235   : > { %725 = vmatpush3.bf16.msra.mxu1 %v394_v20 }
 0x236   : > { %736 = vmatprep.subr.bf16.mxu1 %v975_v0 }
 0x238   : > { %727 = vmatmul.mubr.msk.bf16.vlgmr.msra.gmra.mrb[4].mxu1 %vm345_vm2, %v807_v9 }
 0x239   : > { %738 = vmatprep.mubr.msk.bf16.mxu1 %vm976_vm0, %v975_v0 }
 0x30b   : > { %v429_v21 = vpop.f32.mrb[4].mxu1 }
 0x30c   : > { %v436_v22 = vmul.f32 0.9, %v429_v21  ;;  %v728_v23 = vpop.f32.mrb[5].mxu1 }
 0x30d   : > { %v432_v24 = vpop.f32.mrb[6].mxu1 }
 0x30e   : > { %v437_v25 = vmul.f32 0.9, %v432_v24  ;;  %v729_v26 = vpop.f32.mrb[7].mxu1  ;;  %v438_v27 = vadd.f32 %v436_v22, %v337_v13 }
 0x310   : > { %v439_v28 = vadd.f32 %v437_v25, %v338_v15 }
 0x312   : > { %v440_v29 = vpack.c.bf16 %v439_v28, %v438_v27 }
 0x314   : > { %731 = vmatpush3.bf16.msra.mxu0 %v440_v29 }
 0x317   : > { %733 = vmatmul.mubr.msk.bf16.vlgmr.msra.gmra.mrb[4].mxu0 %vm345_vm2, %v807_v9 }
 0x3ea   : > { %v475_v30 = vpop.f32.mrb[4].mxu0 }
 0x3eb   : > { %v482_v31 = vmul.f32 0.9, %v475_v30  ;;  %v734_v32 = vpop.f32.mrb[5].mxu0 }
 0x3ec   : > { %v478_v33 = vpop.f32.mrb[6].mxu0 }
 0x3ed   : > { %v483_v34 = vmul.f32 0.9, %v478_v33  ;;  %v735_v35 = vpop.f32.mrb[7].mxu0  ;;  %v484_v36 = vadd.f32 %v482_v31, %v337_v13 }
 0x3ef   : > { %v485_v37 = vadd.f32 %v483_v34, %v338_v15 }
 0x3f1   : > { %v486_v38 = vpack.c.bf16 %v485_v37, %v484_v36 }
 0x3f3   : > { %737 = vmatpush3.bf16.msra.mxu1 %v486_v38 }
 0x3f6   : > { %739 = vmatmul.mubr.msk.bf16.vlgmr.msra.gmra.mrb[8].mxu1 %vm345_vm2, %v807_v9 }
 0x4c9   : > { %v521_v39 = vpop.f32.mrb[8].mxu1 }
 0x4ca   : > { %v528_v40 = vmul.f32 0.9, %v521_v39  ;;  %v740_v41 = vpop.f32.mrb[9].mxu1 }
 0x4cb   : > { %v524_v42 = vpop.f32.mrb[10].mxu1 }
 0x4cc   : > { %v530_v43 = vadd.f32 %v528_v40, %v337_v13  ;;  %v529_v44 = vmul.f32 0.9, %v524_v42  ;;  %v741_v45 = vpop.f32.mrb[11].mxu1 }
 0x4ce   : > { %532 = vst [vmem:[%s265_s30] sm:$0xff] %v530_v43  ;;  %v531_v46 = vadd.f32 %v529_v44, %v338_v15 }
 0x4d0   : > { %533 = vst [vmem:[%s265_s30 + $0x8] sm:$0xff] %v531_v46 }
 0x4d1   : > { %911 = shalt.err (!%p908_p10)
}
 0x4d2   : > { %s912_s10 = scalar_lea.hbm %s1224_s28, 256  ;;  %s916_s26 = scalar_lea.hbm %s1271_s3, 512 }
 0x4d3   : > { %p913_p11 = scmp.ne.s32.totalorder %s1224_s28, %s912_s10  ;;  %p917_p5 = scmp.lt.u32.totalorder %s1224_s28, %s1271_s3 }
 0x4d4   : > { %p918_p2 = scmp.lt.u32.totalorder %s916_s26, %s912_s10  ;;  %p920_p13 = scmp.lt.u32.totalorder %s912_s10, %s1224_s28 }
 0x4d5   : > { %p914_p4 = pnand %p913_p11, %p1290_p7 }
 0x4d6   : > { %p919_p1 = por %p918_p2, %p917_p5 }
 0x4d7   : > { %p915_p3 = pneg %p914_p4 }
 0x4d8   : > { %p921_p6 = por %p920_p13, %p919_p1 }
 0x4da   : > { %p922_p9 = pnand %p921_p6, %p915_p3 }
 0x4dc   : > { %925 = shalt.err (!%p922_p9)
}
 0x4dd   : > { %s978_s19 = smov 128   ;;  %s979_s22 = smov 8  }
 0x4de   : > { %748 = dma.vmem_to_hbm [thread:$0]  (%p1290_p7), %s1219_s5, 256, %s1224_s28, %s535_s25, %s978_s19, %s978_s19, %s979_s22  }
 0x4df PF: > { %s563_s30 = sand.u32 1, %s956_s12   ;;  %p1291_p12 = scmp.ne.s32.totalorder %s1280_s24, 0 }
 0x4e0   : > { %p1292_p0 = scmp.ge.s32.totalorder %s968_s15, 2  ;;  %s564_s17 = scalar_lea.sflag [#allocation4], %s563_s30 }
 0x4e2   : > { %p761_p8 = pnand %p1292_p0, %p1291_p12 }
 0x4e4   : > { %951 = dma.done.wait (!%p761_p8), %s564_s17, 256  }
 0x4e5   : > { %953 = vsyncadd (!%p761_p8), %s564_s17, 4294967040  ;;  %p19_p10 = scmp.ge.s32.totalorder %s1025_s18, 4   ;;  %s1293_s12 = smov %s960_s13 }
 0x4e6   : > { %s1294_s13 = smov %s964_s14  ;;  %s1295_s14 = smov %s1037_s21 }
 0x4e7   : > { %s1296_s15 = smov %s1025_s18  ;;  %21 = sbr.rel (!%p19_p10) target bundleno = 9 (0x9), region = 101 }
 0x4ee   :  { %569 = vsyncpa [#allocation3], 1 }
 0x4ef   :  { %571 = vsyncpa [#allocation3 + $0x1], 1 }
 0x4f0   :  { %572 = vsyncpa [#allocation6], 1 }
 0x4f1   :  { %574 = vsyncpa [#allocation6 + $0x1], 1 }
 0x4f2   :  { %575 = vsyncpa [#allocation4], 1 }
 0x4f3   :  { %577 = vsyncpa [#allocation4 + $0x1], 1 }

</bundles_post_ra>
